<compile_context>
chip_gen: v5e
topology: v5e:2x2
jax: 0.10.0
libtpu: 0.0.40
codegen_flags: <defaults>
</compile_context>

<pallas_src>
import jax
import jax.numpy as jnp
from jax.experimental import pallas as pl
from jax.experimental.pallas import tpu as pltpu
import numpy as np


def sylvester_kernel(zk_ref, r1_ref, r2_ref, q_ref, b_ref, d1_ref, d2_ref,
                     z_ref, ldj_ref):
    # Batch-on-lanes: the last dim of every ref is the batch tile (lane-dense).
    zk = zk_ref[...].astype(jnp.float32)   # (Z, TB)
    r1 = r1_ref[...].astype(jnp.float32)   # (M, M, TB)  indexed [m_reduce, n_out, b]
    r2 = r2_ref[...].astype(jnp.float32)   # (M, M, TB)
    q = q_ref[...].astype(jnp.float32)     # (Z, M, TB)  indexed [z, m, b]
    b = b_ref[...].astype(jnp.float32)     # (M, TB)
    d1 = d1_ref[...].astype(jnp.float32)   # (M, TB)  diag(R1)
    d2 = d2_ref[...].astype(jnp.float32)   # (M, TB)  diag(R2)

    # u_m = sum_z zk_z * Q[z, m]                      (leading-axis reduce, VPU)
    u = jnp.sum(q * zk[:, None, :], axis=0)           # (M, TB)
    # s_n = sum_m u_m * R2[n, m] + b_n                (leading-axis reduce)
    s = jnp.sum(r2 * u[:, None, :], axis=0) + b       # (M, TB)
    h = jnp.tanh(s)                                   # (M, TB)  (EUP)
    # t_n = sum_m R1[n, m] * h_m                      (leading-axis reduce)
    t = jnp.sum(r1 * h[:, None, :], axis=0)           # (M, TB)
    # z_z = zk_z + sum_n Q[z, n] * t_n                (sublane reduce; XLU slack)
    z = zk + jnp.sum(q * t[None, :, :], axis=1)       # (Z, TB)
    z_ref[...] = z.astype(z_ref.dtype)                # lane-dense store

    # log_det = sum_n log|1 + (1 - h^2) * diag(R1) * diag(R2)|
    diag_j = (1.0 - h * h) * d1 * d2 + 1.0            # (M, TB)
    ldj = jnp.sum(jnp.log(jnp.abs(diag_j)), axis=0, keepdims=True)   # (1, TB)
    ldj_ref[...] = ldj.astype(ldj_ref.dtype)          # full-width lane-dense vst


def _pick_block_b(B):
    """Batch tile: 128-lane multiple, biggest block that keeps >=2 grid steps."""
    if B % 128 != 0:
        return B                       # single full-extent block (small/ragged B)
    for cand in (1024, 512, 256, 128):
        if B % cand == 0 and B // cand >= 2:
            return cand
    return 128                         # B == 128: one dense block


def sylvester_forward(zk, r1, r2, q_ortho, b, *, block_b=None, q_dtype=None):
    """Returns (z, log_det_j) matching Sylvester._forward with sum_ldj=True."""
    B, Z = zk.shape
    M = r1.shape[-1]

    # --- batch-on-lanes operand layout (ideally produced upstream) -----------
    zk_t = zk.T                                        # (Z, B)
    q_t = jnp.transpose(q_ortho, (1, 2, 0))            # (Z, M, B)
    r1_t = jnp.transpose(r1, (2, 1, 0))                # (M_reduce, M_out, B)
    r2_t = jnp.transpose(r2, (2, 1, 0))                # (M_reduce, M_out, B)
    b_t = jnp.reshape(b, (B, M)).T                     # (M, B)   (squeezed)
    d1_t = jnp.diagonal(r1, axis1=-2, axis2=-1).T      # (M, B)
    d2_t = jnp.diagonal(r2, axis1=-2, axis2=-1).T      # (M, B)
    if q_dtype is not None:
        q_t = q_t.astype(q_dtype)                      # opt-in bf16 streaming

    if block_b is None:
        block_b = _pick_block_b(B)
    assert block_b == B or (B % block_b == 0 and block_b % 128 == 0), (
        "block_b must equal B or be a 128-multiple dividing B")
    grid = (B // block_b,)

    q_bytes = jnp.dtype(q_t.dtype).itemsize
    cost = pl.CostEstimate(
        flops=int(B * (4 * Z * M + 4 * M * M + 8 * M + 2 * Z)),
        transcendentals=int(B * 2 * M),
        bytes_accessed=int(
            B * Z * 4                       # zk in
            + B * Z * M * q_bytes           # q in (dominant stream)
            + 2 * B * M * M * 4             # r1, r2 in
            + 3 * B * M * 4                 # b, diag(r1), diag(r2) in
            + B * Z * 4                     # z out
            + B * 4),                       # log_det out
    )

    z_t, ldj = pl.pallas_call(
        sylvester_kernel,
        grid=grid,
        in_specs=[
            pl.BlockSpec((Z, block_b), lambda i: (0, i)),
            pl.BlockSpec((M, M, block_b), lambda i: (0, 0, i)),
            pl.BlockSpec((M, M, block_b), lambda i: (0, 0, i)),
            pl.BlockSpec((Z, M, block_b), lambda i: (0, 0, i)),
            pl.BlockSpec((M, block_b), lambda i: (0, i)),
            pl.BlockSpec((M, block_b), lambda i: (0, i)),
            pl.BlockSpec((M, block_b), lambda i: (0, i)),
        ],
        out_specs=(
            pl.BlockSpec((Z, block_b), lambda i: (0, i)),
            pl.BlockSpec((1, block_b), lambda i: (0, i)),
        ),
        out_shape=(
            jax.ShapeDtypeStruct((Z, B), jnp.float32),
            jax.ShapeDtypeStruct((1, B), jnp.float32),
        ),
        compiler_params=pltpu.CompilerParams(
            dimension_semantics=("parallel",),   # megacore / v7x 2-TC sharding
            vmem_limit_bytes=32 * 1024 * 1024,
        ),
        cost_estimate=cost,
    )(zk_t, r1_t, r2_t, q_t, b_t, d1_t, d2_t)

    # Transpose back to the caller's batch-major layout.
    return z_t.T, ldj[0]


def sylvester_reference(zk, r1, r2, q_ortho, b):
    """Pure-JAX reference mirroring the PyTorch code."""
    zk3 = zk[:, None, :]
    diag_r1 = jnp.diagonal(r1, axis1=-2, axis2=-1)
    diag_r2 = jnp.diagonal(r2, axis1=-2, axis2=-1)
    qr2 = q_ortho @ jnp.swapaxes(r2, -2, -1)
    qr1 = q_ortho @ r1
    r2qzb = zk3 @ qr2 + b
    z = jnp.tanh(r2qzb) @ jnp.swapaxes(qr1, -2, -1) + zk3
    z = z[:, 0, :]
    h_deriv = 1.0 - jnp.tanh(r2qzb) ** 2
    diag_j = h_deriv[:, 0, :] * diag_r1 * diag_r2 + 1.0
    log_det_j = jnp.sum(jnp.log(jnp.abs(diag_j)), axis=-1)
    return z, log_det_j


def _make_inputs(key, B, Z, M):
    k_zk, k_r1, k_r2, k_q, k_b = jax.random.split(key, 5)
    zk = jax.random.normal(k_zk, (B, Z), dtype=jnp.float32)
    r1 = jax.random.normal(k_r1, (B, M, M), dtype=jnp.float32) * 0.1
    r2 = jax.random.normal(k_r2, (B, M, M), dtype=jnp.float32) * 0.1
    q_ortho = jax.random.normal(k_q, (B, Z, M), dtype=jnp.float32) * 0.1
    b = jax.random.normal(k_b, (B, 1, M), dtype=jnp.float32) * 0.1
    return zk, r1, r2, q_ortho, b


if __name__ == "__main__":
    Z = 32             # z_size
    M = 8              # num_ortho_vecs
    key = jax.random.PRNGKey(0)
    k_small, k_big = jax.random.split(key, 2)

    # Small-shape check (single full-extent block).
    zk, r1, r2, q_ortho, b = _make_inputs(k_small, 2, Z, M)
    z, log_det_j = sylvester_forward(zk, r1, r2, q_ortho, b)
    jax.block_until_ready((z, log_det_j))
    z_ref, ldj_ref = sylvester_reference(zk, r1, r2, q_ortho, b)
    np.testing.assert_allclose(np.asarray(z), np.asarray(z_ref), rtol=1e-4, atol=1e-4)
    np.testing.assert_allclose(np.asarray(log_det_j), np.asarray(ldj_ref),
                               rtol=1e-4, atol=1e-4)

    # Lane-dense multi-block check (exercises the gridded, 2-step path).
    zk2, r12, r22, q2, b2 = _make_inputs(k_big, 256, Z, M)
    z2, ldj2 = sylvester_forward(zk2, r12, r22, q2, b2)
    jax.block_until_ready((z2, ldj2))
    z2_ref, ldj2_ref = sylvester_reference(zk2, r12, r22, q2, b2)
    np.testing.assert_allclose(np.asarray(z2), np.asarray(z2_ref), rtol=1e-4, atol=1e-4)
    np.testing.assert_allclose(np.asarray(ldj2), np.asarray(ldj2_ref),
                               rtol=1e-4, atol=1e-4)

    print("KERNEL_OK")
</pallas_src>

<mosaic_0001>
module attributes {stable_mosaic.version = 11 : i64} {
  func.func @sylvester_kernel(%arg0: i32, %arg1: memref<32x2xf32, #tpu.memory_space<vmem>>, %arg2: memref<8x8x2xf32, #tpu.memory_space<vmem>>, %arg3: memref<8x8x2xf32, #tpu.memory_space<vmem>>, %arg4: memref<32x8x2xf32, #tpu.memory_space<vmem>>, %arg5: memref<8x2xf32, #tpu.memory_space<vmem>>, %arg6: memref<8x2xf32, #tpu.memory_space<vmem>>, %arg7: memref<8x2xf32, #tpu.memory_space<vmem>>, %arg8: memref<32x2xf32, #tpu.memory_space<vmem>>, %arg9: memref<1x2xf32, #tpu.memory_space<vmem>>) attributes {dimension_semantics = [#tpu.dimension_semantics<parallel>], iteration_bounds = array<i64: 1>, scalar_prefetch = 0 : i64, scratch_operands = 0 : i64, tpu.core_type = #tpu.core_type<tc>, window_params = [{transform_indices = @transform_0, window_bounds = array<i64: 32, 2>}, {transform_indices = @transform_1, window_bounds = array<i64: 8, 8, 2>}, {transform_indices = @transform_2, window_bounds = array<i64: 8, 8, 2>}, {transform_indices = @transform_3, window_bounds = array<i64: 32, 8, 2>}, {transform_indices = @transform_4, window_bounds = array<i64: 8, 2>}, {transform_indices = @transform_5, window_bounds = array<i64: 8, 2>}, {transform_indices = @transform_6, window_bounds = array<i64: 8, 2>}, {transform_indices = @transform_7, window_bounds = array<i64: 32, 2>}, {transform_indices = @transform_8, window_bounds = array<i64: 1, 2>}]} {
    %c0 = arith.constant 0 : index
    %c0_0 = arith.constant 0 : index
    %0 = vector.load %arg1[%c0, %c0_0] : memref<32x2xf32, #tpu.memory_space<vmem>>, vector<32x2xf32>
    %c0_1 = arith.constant 0 : index
    %c0_2 = arith.constant 0 : index
    %c0_3 = arith.constant 0 : index
    %1 = vector.load %arg2[%c0_1, %c0_2, %c0_3] : memref<8x8x2xf32, #tpu.memory_space<vmem>>, vector<8x8x2xf32>
    %c0_4 = arith.constant 0 : index
    %c0_5 = arith.constant 0 : index
    %c0_6 = arith.constant 0 : index
    %2 = vector.load %arg3[%c0_4, %c0_5, %c0_6] : memref<8x8x2xf32, #tpu.memory_space<vmem>>, vector<8x8x2xf32>
    %c0_7 = arith.constant 0 : index
    %c0_8 = arith.constant 0 : index
    %c0_9 = arith.constant 0 : index
    %3 = vector.load %arg4[%c0_7, %c0_8, %c0_9] : memref<32x8x2xf32, #tpu.memory_space<vmem>>, vector<32x8x2xf32>
    %c0_10 = arith.constant 0 : index
    %c0_11 = arith.constant 0 : index
    %4 = vector.load %arg5[%c0_10, %c0_11] : memref<8x2xf32, #tpu.memory_space<vmem>>, vector<8x2xf32>
    %c0_12 = arith.constant 0 : index
    %c0_13 = arith.constant 0 : index
    %5 = vector.load %arg6[%c0_12, %c0_13] : memref<8x2xf32, #tpu.memory_space<vmem>>, vector<8x2xf32>
    %c0_14 = arith.constant 0 : index
    %c0_15 = arith.constant 0 : index
    %6 = vector.load %arg7[%c0_14, %c0_15] : memref<8x2xf32, #tpu.memory_space<vmem>>, vector<8x2xf32>
    %7 = vector.shape_cast %0 : vector<32x2xf32> to vector<32x1x2xf32>
    %8 = vector.broadcast %7 : vector<32x1x2xf32> to vector<32x8x2xf32>
    %9 = arith.mulf %3, %8 : vector<32x8x2xf32>
    %cst = arith.constant dense<0.000000e+00> : vector<8x2xf32>
    %10 = vector.multi_reduction <add>, %9, %cst [0] : vector<32x8x2xf32> to vector<8x2xf32>
    %11 = vector.shape_cast %10 : vector<8x2xf32> to vector<8x1x2xf32>
    %12 = vector.broadcast %11 : vector<8x1x2xf32> to vector<8x8x2xf32>
    %13 = arith.mulf %2, %12 : vector<8x8x2xf32>
    %cst_16 = arith.constant dense<0.000000e+00> : vector<8x2xf32>
    %14 = vector.multi_reduction <add>, %13, %cst_16 [0] : vector<8x8x2xf32> to vector<8x2xf32>
    %15 = arith.addf %14, %4 : vector<8x2xf32>
    %16 = math.tanh %15 : vector<8x2xf32>
    %17 = vector.shape_cast %16 : vector<8x2xf32> to vector<8x1x2xf32>
    %18 = vector.broadcast %17 : vector<8x1x2xf32> to vector<8x8x2xf32>
    %19 = arith.mulf %1, %18 : vector<8x8x2xf32>
    %cst_17 = arith.constant dense<0.000000e+00> : vector<8x2xf32>
    %20 = vector.multi_reduction <add>, %19, %cst_17 [0] : vector<8x8x2xf32> to vector<8x2xf32>
    %21 = vector.shape_cast %20 : vector<8x2xf32> to vector<1x8x2xf32>
    %22 = vector.broadcast %21 : vector<1x8x2xf32> to vector<32x8x2xf32>
    %23 = arith.mulf %3, %22 : vector<32x8x2xf32>
    %cst_18 = arith.constant dense<0.000000e+00> : vector<32x2xf32>
    %24 = vector.multi_reduction <add>, %23, %cst_18 [1] : vector<32x8x2xf32> to vector<32x2xf32>
    %25 = arith.addf %0, %24 : vector<32x2xf32>
    %c0_19 = arith.constant 0 : index
    %c0_20 = arith.constant 0 : index
    %26 = vector.load %arg8[%c0_19, %c0_20] : memref<32x2xf32, #tpu.memory_space<vmem>>, vector<32x2xf32>
    tpu.vector_store %arg8[%c0_19, %c0_20], %25 {strides = array<i32>} : memref<32x2xf32, #tpu.memory_space<vmem>>, vector<32x2xf32>,
    %27 = arith.mulf %16, %16 : vector<8x2xf32>
    %cst_21 = arith.constant 1.000000e+00 : f32
    %28 = vector.broadcast %cst_21 : f32 to vector<8x2xf32>
    %29 = arith.subf %28, %27 : vector<8x2xf32>
    %30 = arith.mulf %29, %5 : vector<8x2xf32>
    %31 = arith.mulf %30, %6 : vector<8x2xf32>
    %cst_22 = arith.constant 1.000000e+00 : f32
    %32 = vector.broadcast %cst_22 : f32 to vector<8x2xf32>
    %33 = arith.addf %31, %32 : vector<8x2xf32>
    %34 = math.absf %33 : vector<8x2xf32>
    %35 = math.log %34 : vector<8x2xf32>
    %cst_23 = arith.constant dense<0.000000e+00> : vector<2xf32>
    %36 = vector.multi_reduction <add>, %35, %cst_23 [0] : vector<8x2xf32> to vector<2xf32>
    %37 = vector.shape_cast %36 : vector<2xf32> to vector<1x2xf32>
    %c0_24 = arith.constant 0 : index
    %c0_25 = arith.constant 0 : index
    %38 = vector.load %arg9[%c0_24, %c0_25] : memref<1x2xf32, #tpu.memory_space<vmem>>, vector<1x2xf32>
    tpu.vector_store %arg9[%c0_24, %c0_25], %37 {strides = array<i32>} : memref<1x2xf32, #tpu.memory_space<vmem>>, vector<1x2xf32>,
    return
  }
  func.func @transform_0(%arg0: i32) -> (i32, i32) {
    %c0_i32 = arith.constant 0 : i32
    %c0_i32_0 = arith.constant 0 : i32
    return %c0_i32, %arg0 : i32, i32
  }
  func.func @transform_1(%arg0: i32) -> (i32, i32, i32) {
    %c0_i32 = arith.constant 0 : i32
    %c0_i32_0 = arith.constant 0 : i32
    %c0_i32_1 = arith.constant 0 : i32
    return %c0_i32, %c0_i32_0, %arg0 : i32, i32, i32
  }
  func.func @transform_2(%arg0: i32) -> (i32, i32, i32) {
    %c0_i32 = arith.constant 0 : i32
    %c0_i32_0 = arith.constant 0 : i32
    %c0_i32_1 = arith.constant 0 : i32
    return %c0_i32, %c0_i32_0, %arg0 : i32, i32, i32
  }
  func.func @transform_3(%arg0: i32) -> (i32, i32, i32) {
    %c0_i32 = arith.constant 0 : i32
    %c0_i32_0 = arith.constant 0 : i32
    %c0_i32_1 = arith.constant 0 : i32
    return %c0_i32, %c0_i32_0, %arg0 : i32, i32, i32
  }
  func.func @transform_4(%arg0: i32) -> (i32, i32) {
    %c0_i32 = arith.constant 0 : i32
    %c0_i32_0 = arith.constant 0 : i32
    return %c0_i32, %arg0 : i32, i32
  }
  func.func @transform_5(%arg0: i32) -> (i32, i32) {
    %c0_i32 = arith.constant 0 : i32
    %c0_i32_0 = arith.constant 0 : i32
    return %c0_i32, %arg0 : i32, i32
  }
  func.func @transform_6(%arg0: i32) -> (i32, i32) {
    %c0_i32 = arith.constant 0 : i32
    %c0_i32_0 = arith.constant 0 : i32
    return %c0_i32, %arg0 : i32, i32
  }
  func.func @transform_7(%arg0: i32) -> (i32, i32) {
    %c0_i32 = arith.constant 0 : i32
    %c0_i32_0 = arith.constant 0 : i32
    return %c0_i32, %arg0 : i32, i32
  }
  func.func @transform_8(%arg0: i32) -> (i32, i32) {
    %c0_i32 = arith.constant 0 : i32
    %c0_i32_0 = arith.constant 0 : i32
    return %c0_i32, %arg0 : i32, i32
  }
}

</mosaic_0001>

<bundles_post_ra>
// kernel: tpu_custom_call.1
= control target key start
LH: loop header
LB: loop body
LE: loop exit
PB: predicated region body
PF: predicated region fallthrough
CT: control target
= control target key end

     0   :  { %s1444_s0 = inlined_call_operand.vmem [shape: f32[32,2], index: 0, kind: input, shape index: {}]   ;;  %s1445_s1 = inlined_call_operand.vmem [shape: f32[8,8,2], index: 1, kind: input, shape index: {}]   ;;  %s1446_s2 = inlined_call_operand.vmem [shape: f32[8,8,2], index: 2, kind: input, shape index: {}]   ;;  %s1447_s3 = inlined_call_operand.vmem [shape: f32[32,8,2], index: 3, kind: input, shape index: {}]   ;;  %s1448_s4 = inlined_call_operand.vmem [shape: f32[8,2], index: 4, kind: input, shape index: {}]   ;;  %s1449_s5 = inlined_call_operand.vmem [shape: f32[8,2], index: 5, kind: input, shape index: {}]   ;;  %s1450_s6 = inlined_call_operand.vmem [shape: f32[8,2], index: 6, kind: input, shape index: {}]   ;;  %s1451_s7 = inlined_call_operand.vmem [shape: f32[32,2], index: 7, kind: output, shape index: {0}]   ;;  %s1452_s8 = inlined_call_operand.hbm [shape: f32[1,2], index: 8, kind: output, shape index: {1}]  }
   0x1   :  { %v29_v0 = vld [vmem:[%s1444_s0] sm:$0xff] }
   0x2   :  { %v88_v1 = vrot.slane %v29_v0, 1  ;;  %v89_v2 = vrot.slane %v29_v0, 2 }
   0x3   :  { %14 = vsyncpa [#allocation3], 0  ;;  %v90_v3 = vrot.slane %v29_v0, 3  ;;  %v116_v4 = vperm.slane %v29_v0, 0  ;;  %v830_v5 = vld [vmem:[%s1447_s3] sm:$0xff]  ;;  %v91_v6 = vrot.slane %v29_v0, 4 }
   0x4   :  { %v117_v7 = vperm.slane %v88_v1, 0  ;;  %v118_v8 = vperm.slane %v89_v2, 0  ;;  %v835_v9 = vld [vmem:[%s1447_s3 + $0x8] sm:$0xff]  ;;  %v840_v10 = vld [vmem:[%s1447_s3 + $0x10] sm:$0xff]  ;;  %v92_v11 = vrot.slane %v29_v0, 5  ;;  %v845_v13 = vld [vmem:[%s1447_s3 + $0x18] sm:$0xff] }
   0x5   :  { %v119_v12 = vperm.slane %v90_v3, 0  ;;  %v180_v14 = vmul.f32 %v116_v4, %v830_v5  ;;  %vm212_vm0 = vcmask 15360   ;;  %v93_v15 = vrot.slane %v29_v0, 6  ;;  %v853_v19 = vld [vmem:[%s1447_s3 + $0x20] sm:$0xff]  ;;  %v30_v23 = vld [vmem:[%s1444_s0 + $0x8] sm:$0xff]  ;;  %v871_v30 = vld [vmem:[%s1447_s3 + $0x30] sm:$0xff] }
   0x6   :  { %v120_v16 = vperm.slane %v91_v6, 0  ;;  %v181_v17 = vmul.f32 %v117_v7, %v835_v9  ;;  %v182_v18 = vmul.f32 %v118_v8, %v840_v10  ;;  %v94_v20 = vrot.slane %v29_v0, 7  ;;  %v862_v24 = vld [vmem:[%s1447_s3 + $0x28] sm:$0xff]  ;;  %v878_v36 = vld [vmem:[%s1447_s3 + $0x38] sm:$0xff]  ;;  %v885_v42 = vld [vmem:[%s1447_s3 + $0x40] sm:$0xff]  ;;  %s733_s24 = sshll.u32 %s1452_s8, 4  ;;  %s734_s24 = int_to_ptr.hbm [resolvable:$true] %s733_s24 }
   0x7   :  { %v121_v21 = vperm.slane %v92_v11, 0  ;;  %v183_v22 = vmul.f32 %v119_v12, %v845_v13  ;;  %v213_v25 = vsel %vm212_vm0, %v180_v14, 0.0  ;;  %v122_v26 = vperm.slane %v93_v15, 0  ;;  %v892_v48 = vld [vmem:[%s1447_s3 + $0x48] sm:$0xff]  ;;  %v899_v54 = vld [vmem:[%s1447_s3 + $0x50] sm:$0xff]  ;;  %v906_v60 = vld [vmem:[%s1447_s3 + $0x58] sm:$0xff] }
   0x8   :  { %v184_v27 = vmul.f32 %v120_v16, %v853_v19  ;;  %v214_v28 = vsel %vm212_vm0, %v181_v17, 0.0  ;;  %v216_v29 = vsel %vm212_vm0, %v182_v18, 0.0  ;;  %v95_v32 = vrot.slane %v30_v23, 1  ;;  %v913_v2 = vld [vmem:[%s1447_s3 + $0x60] sm:$0xff]  ;;  %v31_v11 = vld [vmem:[%s1444_s0 + $0x10] sm:$0xff]  ;;  %v923_v12 = vld [vmem:[%s1447_s3 + $0x68] sm:$0xff] }
   0x9   :  { %v215_v31 = vadd.f32 %v214_v28, %v213_v25  ;;  %v123_v33 = vperm.slane %v94_v20, 0  ;;  %v185_v34 = vmul.f32 %v121_v21, %v862_v24  ;;  %v218_v35 = vsel %vm212_vm0, %v183_v22, 0.0  ;;  %v930_v18 = vld [vmem:[%s1447_s3 + $0x70] sm:$0xff] }
   0xa   :  { %v96_v38 = vrot.slane %v30_v23, 2  ;;  %v124_v39 = vperm.slane %v30_v23, 0  ;;  %v186_v40 = vmul.f32 %v122_v26, %v871_v30  ;;  %v220_v41 = vsel %vm212_vm0, %v184_v27, 0.0  ;;  %v937_v26 = vld [vmem:[%s1447_s3 + $0x78] sm:$0xff] }
   0xb   :  { %v217_v37 = vadd.f32 %v216_v29, %v215_v31  ;;  %v97_v44 = vrot.slane %v30_v23, 3  ;;  %v125_v45 = vperm.slane %v95_v32, 0  ;;  %v187_v46 = vmul.f32 %v123_v33, %v878_v36  ;;  %v944_v33 = vld [vmem:[%s1447_s3 + $0x80] sm:$0xff] }
   0xc   :  { %v222_v47 = vsel %vm212_vm0, %v185_v34, 0.0  ;;  %v98_v50 = vrot.slane %v30_v23, 4  ;;  %v126_v51 = vperm.slane %v96_v38, 0  ;;  %v188_v52 = vmul.f32 %v124_v39, %v885_v42 }
   0xd   :  { %v219_v43 = vadd.f32 %v218_v35, %v217_v37  ;;  %v224_v53 = vsel %vm212_vm0, %v186_v40, 0.0  ;;  %v99_v56 = vrot.slane %v30_v23, 5  ;;  %v127_v57 = vperm.slane %v97_v44, 0  ;;  %v951_v40 = vld [vmem:[%s1447_s3 + $0x88] sm:$0xff] }
   0xe   :  { %v189_v58 = vmul.f32 %v125_v45, %v892_v48  ;;  %v226_v59 = vsel %vm212_vm0, %v187_v46, 0.0  ;;  %v100_v62 = vrot.slane %v30_v23, 6  ;;  %v128_v63 = vperm.slane %v98_v50, 0 }
   0xf   :  { %v221_v49 = vadd.f32 %v220_v41, %v219_v43  ;;  %v190_v0 = vmul.f32 %v126_v51, %v899_v54  ;;  %v228_v1 = vsel %vm212_vm0, %v188_v52, 0.0  ;;  %v101_v4 = vrot.slane %v30_v23, 7 }
  0x10   :  { %v129_v6 = vperm.slane %v99_v56, 0  ;;  %v191_v7 = vmul.f32 %v127_v57, %v906_v60  ;;  %v230_v8 = vsel %vm212_vm0, %v189_v58, 0.0  ;;  %v130_v15 = vperm.slane %v100_v62, 0  ;;  %v972_v62 = vld [vmem:[%s1447_s3 + $0xa0] sm:$0xff] }
  0x11   :  { %v223_v55 = vadd.f32 %v222_v47, %v221_v49  ;;  %v192_v16 = vmul.f32 %v128_v63, %v913_v2  ;;  %v232_v17 = vsel %vm212_vm0, %v190_v0, 0.0  ;;  %v102_v21 = vrot.slane %v31_v11, 1  ;;  %v958_v47 = vld [vmem:[%s1447_s3 + $0x90] sm:$0xff] }
  0x12   :  { %v131_v22 = vperm.slane %v101_v4, 0  ;;  %v193_v23 = vmul.f32 %v129_v6, %v923_v12  ;;  %v234_v25 = vsel %vm212_vm0, %v191_v7, 0.0  ;;  %v103_v28 = vrot.slane %v31_v11, 2  ;;  %v979_v6 = vld [vmem:[%s1444_s0 + $0x18] sm:$0xff]  ;;  %v984_v7 = vld [vmem:[%s1447_s3 + $0xa8] sm:$0xff] }
  0x13   :  { %v225_v61 = vadd.f32 %v224_v53, %v223_v55  ;;  %v132_v29 = vperm.slane %v31_v11, 0  ;;  %v194_v31 = vmul.f32 %v130_v15, %v930_v18  ;;  %v236_v32 = vsel %vm212_vm0, %v192_v16, 0.0  ;;  %v965_v55 = vld [vmem:[%s1447_s3 + $0x98] sm:$0xff]  ;;  %v991_v16 = vld [vmem:[%s1447_s3 + $0xb0] sm:$0xff] }
  0x14   :  { %v104_v35 = vrot.slane %v31_v11, 3  ;;  %v133_v37 = vperm.slane %v102_v21, 0  ;;  %v195_v38 = vmul.f32 %v131_v22, %v937_v26  ;;  %v238_v39 = vsel %vm212_vm0, %v193_v23, 0.0 }
  0x15   :  { %v227_v3 = vadd.f32 %v226_v59, %v225_v61  ;;  %v105_v43 = vrot.slane %v31_v11, 4  ;;  %v134_v44 = vperm.slane %v103_v28, 0  ;;  %v196_v45 = vmul.f32 %v132_v29, %v944_v33 }
  0x16   :  { %v240_v46 = vsel %vm212_vm0, %v194_v31, 0.0  ;;  %v106_v50 = vrot.slane %v31_v11, 5  ;;  %v135_v51 = vperm.slane %v104_v35, 0  ;;  %v197_v52 = vmul.f32 %v133_v37, %v951_v40 }
  0x17   :  { %v229_v14 = vadd.f32 %v228_v1, %v227_v3  ;;  %v242_v53 = vsel %vm212_vm0, %v195_v38, 0.0  ;;  %v107_v57 = vrot.slane %v31_v11, 6  ;;  %v136_v58 = vperm.slane %v105_v43, 0  ;;  %v1016_v43 = vld [vmem:[%s1447_s3 + $0xc8] sm:$0xff] }
  0x18   :  { %v198_v59 = vmul.f32 %v134_v44, %v958_v47  ;;  %v244_v61 = vsel %vm212_vm0, %v196_v45, 0.0  ;;  %v108_v0 = vrot.slane %v31_v11, 7  ;;  %v137_v1 = vperm.slane %v106_v50, 0 }
  0x19   :  { %v231_v20 = vadd.f32 %v230_v8, %v229_v14  ;;  %v199_v3 = vmul.f32 %v135_v51, %v965_v55  ;;  %v246_v4 = vsel %vm212_vm0, %v197_v52, 0.0  ;;  %v138_v14 = vperm.slane %v107_v57, 0  ;;  %v1024_v51 = vld [vmem:[%s1447_s3 + $0xd0] sm:$0xff] }
  0x1a   :  { %v200_v15 = vmul.f32 %v136_v58, %v972_v62  ;;  %v248_v11 = vsel %vm212_vm0, %v198_v59, 0.0  ;;  %v139_v21 = vperm.slane %v108_v0, 0  ;;  %v201_v22 = vmul.f32 %v137_v1, %v984_v7  ;;  %v1032_v59 = vld [vmem:[%s1447_s3 + $0xd8] sm:$0xff] }
  0x1b   :  { %v233_v27 = vadd.f32 %v232_v17, %v231_v20  ;;  %v109_v20 = vrot.slane %v979_v6, 1  ;;  %v250_v23 = vsel %vm212_vm0, %v199_v3, 0.0  ;;  %v110_v28 = vrot.slane %v979_v6, 2 }
  0x1c   :  { %v140_v29 = vperm.slane %v979_v6, 0  ;;  %v202_v31 = vmul.f32 %v138_v14, %v991_v16  ;;  %v111_v37 = vrot.slane %v979_v6, 3  ;;  %v112_v45 = vrot.slane %v979_v6, 4 }
  0x1d   :  { %v235_v34 = vadd.f32 %v234_v25, %v233_v27  ;;  %v999_v25 = vld [vmem:[%s1447_s3 + $0xb8] sm:$0xff]  ;;  %v141_v38 = vperm.slane %v109_v20, 0  ;;  %v115_v14 = vrot.slane %v979_v6, 7  ;;  %v1048_v20 = vld [vmem:[%s1447_s3 + $0xe8] sm:$0xff]  ;;  %vm722_vm1 = vcmask 8192  }
  0x1e   :  { %v256_v50 = vsel %vm212_vm0, %v202_v31, 0.0  ;;  %v144_v0 = vperm.slane %v112_v45, 0  ;;  %vm660_vm2 = vcmask 1041409   ;;  %vm662_vm3 = vcmask 1042434  }
  0x1f   :  { %v237_v41 = vadd.f32 %v236_v32, %v235_v34  ;;  %v252_v32 = vsel %vm212_vm0, %v200_v15, 0.0  ;;  %v1008_v34 = vld [vmem:[%s1447_s3 + $0xc0] sm:$0xff]  ;;  %v205_v57 = vmul.f32 %v141_v38, %v1016_v43  ;;  %v147_v31 = vperm.slane %v115_v14, 0  ;;  %v44_v14 = vld [vmem:[%s1446_s2 + $0x18] sm:$0xff] }
  0x20   :  { %vm664_vm4 = vcmask 1043459   ;;  %vm666_vm5 = vcmask 1044484   ;;  %vm668_vm6 = vcmask 1045509   ;;  %vm670_vm7 = vcmask 1046534  }
  0x21   :  { %v239_v49 = vadd.f32 %v238_v39, %v237_v41  ;;  %v203_v39 = vmul.f32 %v139_v21, %v999_v25  ;;  %v254_v41 = vsel %vm212_vm0, %v201_v22, 0.0  ;;  %vm672_vm8 = vcmask 1047559  }
  0x23   :  { %v241_v56 = vadd.f32 %v240_v46, %v239_v49  ;;  %v142_v46 = vperm.slane %v110_v28, 0  ;;  %v204_v49 = vmul.f32 %v140_v29, %v1008_v34  ;;  %v258_v58 = vsel %vm212_vm0, %v203_v39, 0.0  ;;  %v1055_v28 = vld [vmem:[%s1447_s3 + $0xf0] sm:$0xff] }
  0x25   :  { %v243_v63 = vadd.f32 %v242_v53, %v241_v56  ;;  %v113_v53 = vrot.slane %v979_v6, 5  ;;  %v143_v56 = vperm.slane %v111_v37, 0  ;;  %v206_v1 = vmul.f32 %v142_v46, %v1024_v51  ;;  %v1062_v37 = vld [vmem:[%s1447_s3 + $0xf8] sm:$0xff] }
  0x26   :  { %v260_v3 = vsel %vm212_vm0, %v204_v49, 0.0  ;;  %v211_v45 = vmul.f32 %v147_v31, %v1062_v37 }
  0x27   :  { %v245_v8 = vadd.f32 %v244_v61, %v243_v63  ;;  %v114_v63 = vrot.slane %v979_v6, 6  ;;  %v145_v15 = vperm.slane %v113_v53, 0 }
  0x28   :  { %v274_v53 = vsel %vm212_vm0, %v211_v45, 0.0 }
  0x29   :  { %v247_v17 = vadd.f32 %v246_v4, %v245_v8  ;;  %v1040_v4 = vld [vmem:[%s1447_s3 + $0xe0] sm:$0xff]  ;;  %v146_v22 = vperm.slane %v114_v63, 0 }
  0x2b   :  { %v249_v27 = vadd.f32 %v248_v11, %v247_v17  ;;  %v207_v11 = vmul.f32 %v143_v56, %v1032_v59  ;;  %v262_v17 = vsel %vm212_vm0, %v205_v57, 0.0  ;;  %v210_v39 = vmul.f32 %v146_v22, %v1055_v28 }
  0x2d   :  { %v251_v35 = vadd.f32 %v250_v23, %v249_v27  ;;  %v208_v23 = vmul.f32 %v144_v0, %v1040_v4  ;;  %v264_v27 = vsel %vm212_vm0, %v206_v1, 0.0 }
  0x2f   :  { %v253_v44 = vadd.f32 %v252_v32, %v251_v35  ;;  %v209_v32 = vmul.f32 %v145_v15, %v1048_v20  ;;  %v266_v35 = vsel %vm212_vm0, %v207_v11, 0.0 }
  0x31   :  { %v255_v52 = vadd.f32 %v254_v41, %v253_v44  ;;  %v268_v41 = vsel %vm212_vm0, %v208_v23, 0.0  ;;  %v270_v46 = vsel %vm212_vm0, %v209_v32, 0.0 }
  0x33   :  { %v257_v61 = vadd.f32 %v256_v50, %v255_v52  ;;  %v272_v50 = vsel %vm212_vm0, %v210_v39, 0.0 }
  0x35   :  { %v259_v8 = vadd.f32 %v258_v58, %v257_v61  ;;  %v41_v58 = vld [vmem:[%s1446_s2] sm:$0xff] }
  0x37   :  { %v261_v21 = vadd.f32 %v260_v3, %v259_v8  ;;  %v42_v3 = vld [vmem:[%s1446_s2 + $0x8] sm:$0xff]  ;;  %v43_v8 = vld [vmem:[%s1446_s2 + $0x10] sm:$0xff] }
  0x39   :  { %v263_v29 = vadd.f32 %v262_v17, %v261_v21 }
  0x3b   :  { %v265_v38 = vadd.f32 %v264_v27, %v263_v29  ;;  %v45_v29 = vld [vmem:[%s1446_s2 + $0x20] sm:$0xff] }
  0x3d   :  { %v267_v44 = vadd.f32 %v266_v35, %v265_v38 }
  0x3f   :  { %v269_v49 = vadd.f32 %v268_v41, %v267_v44  ;;  %v46_v44 = vld [vmem:[%s1446_s2 + $0x28] sm:$0xff] }
  0x41   :  { %v271_v52 = vadd.f32 %v270_v46, %v269_v49 }
  0x43   :  { %v273_v56 = vadd.f32 %v272_v50, %v271_v52 }
  0x45   :  { %v275_v57 = vadd.f32 %v274_v53, %v273_v56  ;;  %v47_v53 = vld [vmem:[%s1446_s2 + $0x30] sm:$0xff] }
  0x47   :  { %v277_v61 = vrot.slane %v275_v57, 1  ;;  %v278_v63 = vrot.slane %v275_v57, 2  ;;  %v279_v0 = vrot.slane %v275_v57, 3  ;;  %v280_v1 = vrot.slane %v275_v57, 4 }
  0x48   :  { %v281_v15 = vrot.slane %v275_v57, 5  ;;  %v282_v11 = vrot.slane %v275_v57, 6  ;;  %v284_v17 = vperm.slane %v275_v57, 0  ;;  %v283_v31 = vrot.slane %v275_v57, 7 }
  0x49   :  { %v285_v21 = vperm.slane %v277_v61, 0  ;;  %v286_v22 = vperm.slane %v278_v63, 0  ;;  %v287_v23 = vperm.slane %v279_v0, 0  ;;  %v288_v27 = vperm.slane %v280_v1, 0  ;;  %v48_v63 = vld [vmem:[%s1446_s2 + $0x38] sm:$0xff] }
  0x4a   :  { %v300_v32 = vmul.f32 %v284_v17, %v41_v58  ;;  %v289_v35 = vperm.slane %v281_v15, 0  ;;  %v290_v46 = vperm.slane %v282_v11, 0  ;;  %v291_v57 = vperm.slane %v283_v31, 0 }
  0x4b   :  { %v301_v38 = vmul.f32 %v285_v21, %v42_v3  ;;  %v302_v39 = vmul.f32 %v286_v22, %v43_v8  ;;  %v303_v41 = vmul.f32 %v287_v23, %v44_v14  ;;  %v304_v49 = vmul.f32 %v288_v27, %v45_v29  ;;  %v81_v27 = vld [vmem:[%s1448_s4] sm:$0xff] }
  0x4c   :  { %v308_v45 = vsel %vm212_vm0, %v300_v32, 0.0  ;;  %v305_v58 = vmul.f32 %v289_v35, %v46_v44  ;;  %v306_v1 = vmul.f32 %v290_v46, %v47_v53  ;;  %v307_v14 = vmul.f32 %v291_v57, %v48_v63  ;;  %v33_v44 = vld [vmem:[%s1445_s1] sm:$0xff]  ;;  %v35_v53 = vld [vmem:[%s1445_s1 + $0x10] sm:$0xff] }
  0x4d   :  { %v309_v50 = vsel %vm212_vm0, %v301_v38, 0.0  ;;  %v311_v52 = vsel %vm212_vm0, %v302_v39, 0.0  ;;  %v313_v61 = vsel %vm212_vm0, %v303_v41, 0.0  ;;  %v315_v3 = vsel %vm212_vm0, %v304_v49, 0.0  ;;  %v82_v41 = vld [vmem:[%s1449_s5] sm:$0xff] }
  0x4e   :  { %v310_v56 = vadd.f32 %v309_v50, %v308_v45  ;;  %v317_v15 = vsel %vm212_vm0, %v305_v58, 0.0  ;;  %v319_v17 = vsel %vm212_vm0, %v306_v1, 0.0  ;;  %v321_v22 = vsel %vm212_vm0, %v307_v14, 0.0  ;;  %v34_v45 = vld [vmem:[%s1445_s1 + $0x8] sm:$0xff]  ;;  %v83_v63 = vld [vmem:[%s1450_s6] sm:$0xff] }
  0x4f   :  { %v37_v14 = vld [vmem:[%s1445_s1 + $0x20] sm:$0xff] }
  0x50   :  { %v312_v0 = vadd.f32 %v311_v52, %v310_v56  ;;  %v36_v56 = vld [vmem:[%s1445_s1 + $0x18] sm:$0xff] }
  0x52   :  { %v314_v8 = vadd.f32 %v313_v61, %v312_v0 }
  0x54   :  { %v316_v11 = vadd.f32 %v315_v3, %v314_v8 }
  0x56   :  { %v318_v21 = vadd.f32 %v317_v15, %v316_v11 }
  0x58   :  { %v320_v23 = vadd.f32 %v319_v17, %v318_v21 }
  0x5a   :  { %v322_v29 = vadd.f32 %v321_v22, %v320_v23 }
  0x5c   :  { %v323_v31 = vadd.f32 %v322_v29, %v81_v27  ;;  %v38_v29 = vld [vmem:[%s1445_s1 + $0x28] sm:$0xff] }
  0x5e   :  { %745 = vtanh.f32 %v323_v31 }
  0x64   :  { %v746_v32 = vpop.eup %745 }
  0x65   :  { %v707_v35 = vmul.f32 %v746_v32, %v746_v32  ;;  %v326_v38 = vrot.slane %v746_v32, 1  ;;  %v327_v39 = vrot.slane %v746_v32, 2  ;;  %v328_v46 = vrot.slane %v746_v32, 3 }
  0x66   :  { %v329_v49 = vrot.slane %v746_v32, 4  ;;  %v330_v50 = vrot.slane %v746_v32, 5  ;;  %v331_v57 = vrot.slane %v746_v32, 6  ;;  %v333_v58 = vperm.slane %v746_v32, 0 }
  0x67   :  { %v708_v52 = vsub.f32 1.0, %v707_v35  ;;  %v334_v61 = vperm.slane %v326_v38, 0  ;;  %v335_v0 = vperm.slane %v327_v39, 0  ;;  %v336_v1 = vperm.slane %v328_v46, 0 }
  0x68   :  { %v337_v3 = vperm.slane %v329_v49, 0  ;;  %v332_v15 = vrot.slane %v746_v32, 7  ;;  %v349_v11 = vmul.f32 %v333_v58, %v33_v44  ;;  %v338_v17 = vperm.slane %v330_v50, 0  ;;  %v39_v32 = vld [vmem:[%s1445_s1 + $0x30] sm:$0xff] }
  0x69   :  { %v709_v8 = vmul.f32 %v708_v52, %v82_v41  ;;  %v350_v21 = vmul.f32 %v334_v61, %v34_v45  ;;  %v351_v22 = vmul.f32 %v335_v0, %v35_v53  ;;  %v352_v23 = vmul.f32 %v336_v1, %v36_v56  ;;  %v40_v53 = vld [vmem:[%s1445_s1 + $0x38] sm:$0xff]  ;;  %s778_s1 = smov [#allocation2]  }
  0x6a   :  { %v339_v31 = vperm.slane %v331_v57, 0  ;;  %v353_v35 = vmul.f32 %v337_v3, %v37_v14  ;;  %v357_v38 = vsel %vm212_vm0, %v349_v11, 0.0  ;;  %v340_v45 = vperm.slane %v332_v15, 0  ;;  %s1238_s21 = sshll.u32 %s778_s1, 4  ;;  %s732_s21 = int_to_ptr.vmem [resolvable:$true] %s1238_s21 }
  0x6b   :  { %v710_v27 = vmul.f32 %v709_v8, %v83_v63  ;;  %v358_v39 = vsel %vm212_vm0, %v350_v21, 0.0  ;;  %v360_v41 = vsel %vm212_vm0, %v351_v22, 0.0  ;;  %v354_v49 = vmul.f32 %v338_v17, %v38_v29 }
  0x6c   :  { %v359_v44 = vadd.f32 %v358_v39, %v357_v38  ;;  %v362_v50 = vsel %vm212_vm0, %v352_v23, 0.0  ;;  %v355_v57 = vmul.f32 %v339_v31, %v39_v32  ;;  %v364_v58 = vsel %vm212_vm0, %v353_v35, 0.0 }
  0x6d   :  { %v711_v46 = vadd.f32 1.0, %v710_v27  ;;  %v356_v63 = vmul.f32 %v340_v45, %v40_v53  ;;  %v366_v0 = vsel %vm212_vm0, %v354_v49, 0.0 }
  0x6e   :  { %v361_v56 = vadd.f32 %v360_v41, %v359_v44  ;;  %v368_v3 = vsel %vm212_vm0, %v355_v57, 0.0 }
  0x6f   :  { %v712_v52 = vand.u32 2147483647, %v711_v46  ;;  %v370_v14 = vsel %vm212_vm0, %v356_v63, 0.0 }
  0x70   :  { %v363_v61 = vadd.f32 %v362_v50, %v361_v56 }
  0x71   :  { %747 = vlog2.f32 %v712_v52 }
  0x72   :  { %v365_v1 = vadd.f32 %v364_v58, %v363_v61 }
  0x74   :  { %v367_v8 = vadd.f32 %v366_v0, %v365_v1 }
  0x76   :  { %v369_v11 = vadd.f32 %v368_v3, %v367_v8 }
  0x77   :  { %v748_v15 = vpop.eup %747 }
  0x78   :  { %v714_v17 = vmul.f32 0.6931472, %v748_v15  ;;  %v1143_v21 = vadd.f32 %v370_v14, %v369_v11 }
  0x7a   :  { %v715_v22 = vsel %vm212_vm0, %v714_v17, 0.0  ;;  %v372_v27 = vmul.f32 %v1143_v21, %v830_v5  ;;  %v373_v29 = vmul.f32 %v1143_v21, %v835_v9  ;;  %v374_v31 = vmul.f32 %v1143_v21, %v840_v10 }
  0x7b   :  { %v716_v23 = vrot.slane %v715_v22, 4  ;;  %v375_v35 = vmul.f32 %v1143_v21, %v845_v13  ;;  %v376_v38 = vmul.f32 %v1143_v21, %v853_v19  ;;  %v377_v39 = vmul.f32 %v1143_v21, %v862_v24 }
  0x7c   :  { %v378_v5 = vmul.f32 %v1143_v21, %v871_v30  ;;  %v379_v9 = vmul.f32 %v1143_v21, %v878_v36  ;;  %v1164_v46 = vmul.f32 %v1143_v21, %v885_v42  ;;  %v1168_v10 = vmul.f32 %v1143_v21, %v892_v48 }
  0x7d   :  { %v717_v41 = vadd.f32 %v716_v23, %v715_v22  ;;  %v1172_v13 = vmul.f32 %v1143_v21, %v899_v54  ;;  %v1176_v19 = vmul.f32 %v1143_v21, %v906_v60  ;;  %v1180_v24 = vmul.f32 %v1143_v21, %v913_v2 }
  0x7e   :  { %v1184_v36 = vmul.f32 %v1143_v21, %v923_v12  ;;  %v1188_v42 = vmul.f32 %v1143_v21, %v930_v18  ;;  %v1192_v48 = vmul.f32 %v1143_v21, %v937_v26  ;;  %v1196_v54 = vmul.f32 %v1143_v21, %v944_v33 }
  0x7f   :  { %v718_v30 = vrot.slane %v717_v41, 2  ;;  %v1200_v60 = vmul.f32 %v1143_v21, %v951_v40  ;;  %v1204_v2 = vmul.f32 %v1143_v21, %v958_v47  ;;  %v1208_v12 = vmul.f32 %v1143_v21, %v965_v55 }
  0x80   :  { %v1212_v26 = vmul.f32 %v1143_v21, %v972_v62  ;;  %v1216_v33 = vmul.f32 %v1143_v21, %v984_v7  ;;  %v1220_v40 = vmul.f32 %v1143_v21, %v991_v16  ;;  %v1224_v47 = vmul.f32 %v1143_v21, %v999_v25 }
  0x81   :  { %v719_v18 = vadd.f32 %v718_v30, %v717_v41  ;;  %v1228_v55 = vmul.f32 %v1143_v21, %v1008_v34  ;;  %v1232_v62 = vmul.f32 %v1143_v21, %v1016_v43  ;;  %v1236_v7 = vmul.f32 %v1143_v21, %v1024_v51 }
  0x82   :  { %v1245_v25 = vmul.f32 %v1143_v21, %v1032_v59  ;;  %v1249_v34 = vmul.f32 %v1143_v21, %v1040_v4  ;;  %v1253_v43 = vmul.f32 %v1143_v21, %v1048_v20  ;;  %v1257_v51 = vmul.f32 %v1143_v21, %v1055_v28 }
  0x83   :  { %v720_v16 = vrot.slane %v719_v18, 1  ;;  %v404_v32 = vsel %vm212_vm0, %v372_v27, 0.0  ;;  %v411_v44 = vsel %vm212_vm0, %v373_v29, 0.0  ;;  %v418_v45 = vsel %vm212_vm0, %v374_v31, 0.0 }
  0x84   :  { %v405_v49 = vrot.slane %v404_v32, 4  ;;  %v412_v50 = vrot.slane %v411_v44, 4  ;;  %v419_v52 = vrot.slane %v418_v45, 4  ;;  %v425_v4 = vsel %vm212_vm0, %v375_v35, 0.0 }
  0x85   :  { %v721_v59 = vadd.f32 %v720_v16, %v719_v18  ;;  %v432_v20 = vsel %vm212_vm0, %v376_v38, 0.0  ;;  %v439_v53 = vsel %vm212_vm0, %v377_v39, 0.0  ;;  %v446_v28 = vsel %vm212_vm0, %v378_v5, 0.0 }
  0x86   :  { %v406_v56 = vadd.f32 %v405_v49, %v404_v32  ;;  %v413_v57 = vadd.f32 %v412_v50, %v411_v44  ;;  %v420_v58 = vadd.f32 %v419_v52, %v418_v45  ;;  %v426_v61 = vrot.slane %v425_v4, 4 }
  0x87   :  { %723 = vst.msk [vmem:[#allocation2] sm:$0x1] %vm722_vm1, %v721_v59  ;;  %v433_v63 = vrot.slane %v432_v20, 4  ;;  %v440_v0 = vrot.slane %v439_v53, 4  ;;  %v447_v1 = vrot.slane %v446_v28, 4  ;;  %v453_v3 = vsel %vm212_vm0, %v379_v9, 0.0 }
  0x88   :  { %736 = dma.vmem_to_hbm [thread:$0]  %s732_s21, 16, %s734_s24, [#allocation3]   ;;  %v407_v8 = vrot.slane %v406_v56, 2  ;;  %v414_v14 = vrot.slane %v413_v57, 2  ;;  %v421_v15 = vrot.slane %v420_v58, 2  ;;  %v427_v11 = vadd.f32 %v426_v61, %v425_v4 }
  0x89   :  { %v434_v17 = vadd.f32 %v433_v63, %v432_v20  ;;  %v441_v22 = vadd.f32 %v440_v0, %v439_v53  ;;  %v448_v23 = vadd.f32 %v447_v1, %v446_v28  ;;  %v454_v27 = vrot.slane %v453_v3, 4 }
  0x8a   :  { %v408_v29 = vadd.f32 %v407_v8, %v406_v56  ;;  %v415_v31 = vadd.f32 %v414_v14, %v413_v57  ;;  %v422_v35 = vadd.f32 %v421_v15, %v420_v58  ;;  %v428_v38 = vrot.slane %v427_v11, 2 }
  0x8b   :  { %v435_v39 = vrot.slane %v434_v17, 2  ;;  %v442_v41 = vrot.slane %v441_v22, 2  ;;  %v449_v5 = vrot.slane %v448_v23, 2  ;;  %v455_v30 = vadd.f32 %v454_v27, %v453_v3 }
  0x8c   :  { %v409_v18 = vrot.slane %v408_v29, 1  ;;  %v416_v16 = vrot.slane %v415_v31, 1  ;;  %v423_v9 = vrot.slane %v422_v35, 1  ;;  %v429_v32 = vadd.f32 %v428_v38, %v427_v11 }
  0x8d   :  { %v436_v44 = vadd.f32 %v435_v39, %v434_v17  ;;  %v443_v45 = vadd.f32 %v442_v41, %v441_v22  ;;  %v450_v59 = vadd.f32 %v449_v5, %v448_v23  ;;  %v456_v49 = vrot.slane %v455_v30, 2 }
  0x8e   :  { %v1271_v50 = vmul.f32 %v1143_v21, %v1062_v37  ;;  %v1273_v52 = vadd.f32 %v409_v18, %v408_v29  ;;  %v1275_v4 = vadd.f32 %v416_v16, %v415_v31  ;;  %v430_v20 = vrot.slane %v429_v32, 1 }
  0x8f   :  { %v437_v53 = vrot.slane %v436_v44, 1  ;;  %v444_v28 = vrot.slane %v443_v45, 1  ;;  %v451_v56 = vrot.slane %v450_v59, 1  ;;  %v457_v57 = vadd.f32 %v456_v49, %v455_v30 }
  0x90   :  { %v1277_v58 = vadd.f32 %v423_v9, %v422_v35  ;;  %v460_v61 = vsel %vm212_vm0, %v1164_v46, 0.0  ;;  %v467_v63 = vsel %vm212_vm0, %v1168_v10, 0.0  ;;  %v474_v37 = vsel %vm212_vm0, %v1172_v13, 0.0 }
  0x91   :  { %v1285_v21 = vadd.f32 %v430_v20, %v429_v32  ;;  %v1287_v0 = vadd.f32 %v437_v53, %v436_v44  ;;  %v1289_v1 = vadd.f32 %v444_v28, %v443_v45  ;;  %v1291_v3 = vadd.f32 %v451_v56, %v450_v59 }
  0x92   :  { %v461_v8 = vrot.slane %v460_v61, 4  ;;  %v468_v14 = vrot.slane %v467_v63, 4  ;;  %v475_v15 = vrot.slane %v474_v37, 4  ;;  %v481_v46 = vsel %vm212_vm0, %v1176_v19, 0.0 }
  0x93   :  { %v458_v11 = vrot.slane %v457_v57, 1  ;;  %v482_v17 = vrot.slane %v481_v46, 4  ;;  %v488_v10 = vsel %vm212_vm0, %v1180_v24, 0.0  ;;  %v495_v13 = vsel %vm212_vm0, %v1184_v36, 0.0 }
  0x94   :  { %v462_v22 = vadd.f32 %v461_v8, %v460_v61  ;;  %v469_v23 = vadd.f32 %v468_v14, %v467_v63  ;;  %v476_v27 = vadd.f32 %v475_v15, %v474_v37  ;;  %v489_v29 = vrot.slane %v488_v10, 4 }
  0x95   :  { %v483_v31 = vadd.f32 %v482_v17, %v481_v46  ;;  %v496_v35 = vrot.slane %v495_v13, 4  ;;  %v502_v38 = vsel %vm212_vm0, %v1188_v42, 0.0  ;;  %v509_v19 = vsel %vm212_vm0, %v1192_v48, 0.0 }
  0x96   :  { %v463_v39 = vrot.slane %v462_v22, 2  ;;  %v470_v41 = vrot.slane %v469_v23, 2  ;;  %v477_v5 = vrot.slane %v476_v27, 2  ;;  %v490_v30 = vadd.f32 %v489_v29, %v488_v10 }
  0x97   :  { %v484_v24 = vrot.slane %v483_v31, 2  ;;  %v497_v18 = vadd.f32 %v496_v35, %v495_v13  ;;  %v503_v16 = vrot.slane %v502_v38, 4  ;;  %v510_v36 = vrot.slane %v509_v19, 4 }
  0x98   :  { %v464_v9 = vadd.f32 %v463_v39, %v462_v22  ;;  %v471_v32 = vadd.f32 %v470_v41, %v469_v23  ;;  %v478_v44 = vadd.f32 %v477_v5, %v476_v27  ;;  %v491_v45 = vrot.slane %v490_v30, 2 }
  0x99   :  { %v485_v59 = vadd.f32 %v484_v24, %v483_v31  ;;  %v498_v49 = vrot.slane %v497_v18, 2  ;;  %v504_v20 = vadd.f32 %v503_v16, %v502_v38  ;;  %v511_v53 = vadd.f32 %v510_v36, %v509_v19 }
  0x9a   :  { %v465_v42 = vrot.slane %v464_v9, 1  ;;  %v472_v28 = vrot.slane %v471_v32, 1  ;;  %v479_v56 = vrot.slane %v478_v44, 1  ;;  %v492_v48 = vadd.f32 %v491_v45, %v490_v30 }
  0x9b   :  { %v486_v61 = vrot.slane %v485_v59, 1  ;;  %v499_v63 = vadd.f32 %v498_v49, %v497_v18  ;;  %v505_v37 = vrot.slane %v504_v20, 2  ;;  %v512_v8 = vrot.slane %v511_v53, 2 }
  0x9c   :  { %v1303_v14 = vadd.f32 %v458_v11, %v457_v57  ;;  %v1305_v15 = vadd.f32 %v465_v42, %v464_v9  ;;  %v1307_v46 = vadd.f32 %v472_v28, %v471_v32  ;;  %v493_v17 = vrot.slane %v492_v48, 1 }
  0x9d   :  { %v1309_v10 = vadd.f32 %v479_v56, %v478_v44  ;;  %v500_v13 = vrot.slane %v499_v63, 1  ;;  %v506_v22 = vadd.f32 %v505_v37, %v504_v20  ;;  %v513_v23 = vadd.f32 %v512_v8, %v511_v53 }
  0x9e   :  { %v1311_v27 = vadd.f32 %v486_v61, %v485_v59  ;;  %v516_v29 = vsel %vm212_vm0, %v1196_v54, 0.0  ;;  %v523_v31 = vsel %vm212_vm0, %v1200_v60, 0.0  ;;  %v530_v57 = vsel %vm212_vm0, %v1204_v2, 0.0 }
  0x9f   :  { %v1319_v11 = vadd.f32 %v493_v17, %v492_v48  ;;  %v1321_v35 = vadd.f32 %v500_v13, %v499_v63  ;;  %v507_v38 = vrot.slane %v506_v22, 1  ;;  %v517_v19 = vrot.slane %v516_v29, 4 }
  0xa0   :  { %v524_v39 = vrot.slane %v523_v31, 4  ;;  %v531_v41 = vrot.slane %v530_v57, 4  ;;  %v537_v5 = vsel %vm212_vm0, %v1208_v12, 0.0  ;;  %v544_v54 = vsel %vm212_vm0, %v1212_v26, 0.0 }
  0xa1   :  { %v1327_v30 = vadd.f32 %v507_v38, %v506_v22  ;;  %v514_v60 = vrot.slane %v513_v23, 1  ;;  %v518_v24 = vadd.f32 %v517_v19, %v516_v29  ;;  %v538_v18 = vrot.slane %v537_v5, 4 }
  0xa2   :  { %v525_v2 = vadd.f32 %v524_v39, %v523_v31  ;;  %v532_v16 = vadd.f32 %v531_v41, %v530_v57  ;;  %v545_v36 = vrot.slane %v544_v54, 4  ;;  %v551_v9 = vsel %vm212_vm0, %v1216_v33, 0.0 }
  0xa3   :  { %v519_v32 = vrot.slane %v518_v24, 2  ;;  %v539_v44 = vadd.f32 %v538_v18, %v537_v5  ;;  %v552_v45 = vrot.slane %v551_v9, 4  ;;  %v558_v12 = vsel %vm212_vm0, %v1220_v40, 0.0 }
  0xa4   :  { %v526_v59 = vrot.slane %v525_v2, 2  ;;  %v533_v49 = vrot.slane %v532_v16, 2  ;;  %v546_v26 = vadd.f32 %v545_v36, %v544_v54  ;;  %v559_v20 = vrot.slane %v558_v12, 4 }
  0xa5   :  { %v520_v53 = vadd.f32 %v519_v32, %v518_v24  ;;  %v540_v42 = vrot.slane %v539_v44, 2  ;;  %v553_v28 = vadd.f32 %v552_v45, %v551_v9  ;;  %v565_v56 = vsel %vm212_vm0, %v1224_v47, 0.0 }
  0xa6   :  { %v527_v48 = vadd.f32 %v526_v59, %v525_v2  ;;  %v534_v61 = vadd.f32 %v533_v49, %v532_v16  ;;  %v547_v63 = vrot.slane %v546_v26, 2  ;;  %v560_v33 = vadd.f32 %v559_v20, %v558_v12 }
  0xa7   :  { %v521_v37 = vrot.slane %v520_v53, 1  ;;  %v541_v8 = vadd.f32 %v540_v42, %v539_v44  ;;  %v554_v17 = vrot.slane %v553_v28, 2  ;;  %v566_v13 = vrot.slane %v565_v56, 4 }
  0xa8   :  { %v528_v22 = vrot.slane %v527_v48, 1  ;;  %v535_v40 = vrot.slane %v534_v61, 1  ;;  %v548_v29 = vadd.f32 %v547_v63, %v546_v26  ;;  %v561_v31 = vrot.slane %v560_v33, 2 }
  0xa9   :  { %v1335_v57 = vadd.f32 %v514_v60, %v513_v23  ;;  %v542_v38 = vrot.slane %v541_v8, 1  ;;  %v555_v19 = vadd.f32 %v554_v17, %v553_v28  ;;  %v567_v39 = vadd.f32 %v566_v13, %v565_v56 }
  0xaa   :  { %v1337_v41 = vadd.f32 %v521_v37, %v520_v53  ;;  %v1339_v47 = vadd.f32 %v528_v22, %v527_v48  ;;  %v549_v5 = vrot.slane %v548_v29, 1  ;;  %v562_v54 = vadd.f32 %v561_v31, %v560_v33 }
  0xab   :  { %v1341_v24 = vadd.f32 %v535_v40, %v534_v61  ;;  %v556_v18 = vrot.slane %v555_v19, 1  ;;  %v568_v2 = vrot.slane %v567_v39, 2  ;;  %v572_v16 = vsel %vm212_vm0, %v1228_v55, 0.0 }
  0xac   :  { %v1345_v36 = vadd.f32 %v542_v38, %v541_v8  ;;  %v563_v23 = vrot.slane %v562_v54, 1  ;;  %v573_v60 = vrot.slane %v572_v16, 4  ;;  %v579_v9 = vsel %vm212_vm0, %v1232_v62, 0.0 }
  0xad   :  { %v1349_v32 = vadd.f32 %v549_v5, %v548_v29  ;;  %v569_v44 = vadd.f32 %v568_v2, %v567_v39  ;;  %v580_v45 = vrot.slane %v579_v9, 4  ;;  %v586_v12 = vsel %vm212_vm0, %v1236_v7, 0.0 }
  0xae   :  { %v1353_v59 = vadd.f32 %v556_v18, %v555_v19  ;;  %v574_v49 = vadd.f32 %v573_v60, %v572_v16  ;;  %v587_v26 = vrot.slane %v586_v12, 4  ;;  %v593_v55 = vsel %vm212_vm0, %v1245_v25, 0.0 }
  0xaf   :  { %v1357_v20 = vadd.f32 %v563_v23, %v562_v54  ;;  %v581_v53 = vadd.f32 %v580_v45, %v579_v9  ;;  %v594_v42 = vrot.slane %v593_v55, 4  ;;  %v600_v62 = vsel %vm212_vm0, %v1249_v34, 0.0 }
  0xb0   :  { %v575_v28 = vrot.slane %v574_v49, 2  ;;  %v588_v56 = vadd.f32 %v587_v26, %v586_v12  ;;  %v601_v48 = vrot.slane %v600_v62, 4  ;;  %v607_v7 = vsel %vm212_vm0, %v1253_v43, 0.0 }
  0xb1   :  { %v570_v61 = vrot.slane %v569_v44, 1  ;;  %v582_v63 = vrot.slane %v581_v53, 2  ;;  %v595_v33 = vadd.f32 %v594_v42, %v593_v55  ;;  %v608_v37 = vrot.slane %v607_v7, 4 }
  0xb2   :  { %v576_v8 = vadd.f32 %v575_v28, %v574_v49  ;;  %v589_v17 = vrot.slane %v588_v56, 2  ;;  %v602_v25 = vadd.f32 %v601_v48, %v600_v62  ;;  %v614_v13 = vsel %vm212_vm0, %v1257_v51, 0.0 }
  0xb3   :  { %v583_v22 = vadd.f32 %v582_v63, %v581_v53  ;;  %v596_v40 = vrot.slane %v595_v33, 2  ;;  %v609_v29 = vadd.f32 %v608_v37, %v607_v7  ;;  %v615_v34 = vrot.slane %v614_v13, 4 }
  0xb4   :  { %v577_v31 = vrot.slane %v576_v8, 1  ;;  %v590_v38 = vadd.f32 %v589_v17, %v588_v56  ;;  %v603_v19 = vrot.slane %v602_v25, 2  ;;  %v621_v43 = vsel %vm212_vm0, %v1271_v50, 0.0 }
  0xb5   :  { %v584_v39 = vrot.slane %v583_v22, 1  ;;  %v597_v5 = vadd.f32 %v596_v40, %v595_v33  ;;  %v610_v54 = vrot.slane %v609_v29, 2  ;;  %v616_v18 = vadd.f32 %v615_v34, %v614_v13 }
  0xb6   :  { %v571_v2 = vadd.f32 %v570_v61, %v569_v44  ;;  %v591_v16 = vrot.slane %v590_v38, 1  ;;  %v604_v23 = vadd.f32 %v603_v19, %v602_v25  ;;  %v622_v60 = vrot.slane %v621_v43, 4 }
  0xb7   :  { %v578_v9 = vadd.f32 %v577_v31, %v576_v8  ;;  %v598_v51 = vrot.slane %v597_v5, 1  ;;  %v611_v45 = vadd.f32 %v610_v54, %v609_v29  ;;  %v617_v12 = vrot.slane %v616_v18, 2 }
  0xb8   :  { %v585_v49 = vadd.f32 %v584_v39, %v583_v22  ;;  %v605_v26 = vrot.slane %v604_v23, 1  ;;  %v623_v55 = vadd.f32 %v622_v60, %v621_v43  ;;  %v592_v53 = vadd.f32 %v591_v16, %v590_v38 }
  0xb9   :  { %v612_v42 = vrot.slane %v611_v45, 1  ;;  %v618_v62 = vadd.f32 %v617_v12, %v616_v18  ;;  %v661_v50 = vsel %vm660_vm2, %v1275_v4, %v1273_v52  ;;  %v599_v28 = vadd.f32 %v598_v51, %v597_v5 }
  0xba   :  { %v624_v44 = vrot.slane %v623_v55, 2  ;;  %v606_v56 = vadd.f32 %v605_v26, %v604_v23  ;;  %v663_v7 = vsel %vm662_vm3, %v1277_v58, %v661_v50  ;;  %v674_v4 = vsel %vm660_vm2, %v1307_v46, %v1305_v15 }
  0xbb   :  { %v619_v48 = vrot.slane %v618_v62, 1  ;;  %v665_v63 = vsel %vm664_vm4, %v1285_v21, %v663_v7  ;;  %v613_v33 = vadd.f32 %v612_v42, %v611_v45  ;;  %v675_v8 = vsel %vm662_vm3, %v1309_v10, %v674_v4 }
  0xbc   :  { %v625_v61 = vadd.f32 %v624_v44, %v623_v55  ;;  %v667_v52 = vsel %vm666_vm5, %v1287_v0, %v665_v63  ;;  %v681_v21 = vsel %vm660_vm2, %v1339_v47, %v1337_v41  ;;  %v676_v0 = vsel %vm664_vm4, %v1311_v27, %v675_v8 }
  0xbd   :  { %v669_v58 = vsel %vm668_vm6, %v1289_v1, %v667_v52  ;;  %v682_v15 = vsel %vm662_vm3, %v1341_v24, %v681_v21  ;;  %v688_v46 = vsel %vm660_vm2, %v585_v49, %v578_v9  ;;  %v620_v25 = vadd.f32 %v619_v48, %v618_v62  ;;  %v749_v24 = vld [vmem:[%s1444_s0] sm:$0xff] }
  0xbe   :  { %v626_v37 = vrot.slane %v625_v61, 1  ;;  %v671_v17 = vsel %vm670_vm7, %v1291_v3, %v669_v58  ;;  %v677_v10 = vsel %vm666_vm5, %v1319_v11, %v676_v0  ;;  %v683_v41 = vsel %vm664_vm4, %v1345_v36, %v682_v15 }
  0xbf   :  { %v673_v1 = vsel %vm672_vm8, %v1303_v14, %v671_v17  ;;  %v678_v3 = vsel %vm668_vm6, %v1321_v35, %v677_v10  ;;  %v684_v27 = vsel %vm666_vm5, %v1349_v32, %v683_v41  ;;  %v689_v47 = vsel %vm662_vm3, %v592_v53, %v688_v46 }
  0xc0   :  { %v699_v13 = vadd.f32 %v749_v24, %v673_v1  ;;  %v627_v14 = vadd.f32 %v626_v37, %v625_v61  ;;  %v679_v11 = vsel %vm670_vm7, %v1327_v30, %v678_v3  ;;  %v685_v36 = vsel %vm668_vm6, %v1353_v59, %v684_v27  ;;  %v750_v59 = vld [vmem:[%s1444_s0 + $0x8] sm:$0xff] }
  0xc1   :  { %v690_v22 = vsel %vm664_vm4, %v599_v28, %v689_v47  ;;  %v680_v35 = vsel %vm672_vm8, %v1335_v57, %v679_v11  ;;  %v686_v32 = vsel %vm670_vm7, %v1357_v20, %v685_v36  ;;  %v751_v20 = vld [vmem:[%s1444_s0 + $0x10] sm:$0xff] }
  0xc2   :  { %v691_v40 = vsel %vm666_vm5, %v606_v56, %v690_v22  ;;  %703 = vst.msk [vmem:[%s1451_s7] sm:$0xff] %vm212_vm0, %v699_v13  ;;  %v687_v30 = vsel %vm672_vm8, %v571_v2, %v686_v32  ;;  %v700_v34 = vadd.f32 %v750_v59, %v680_v35 }
  0xc3   :  { %v692_v29 = vsel %vm668_vm6, %v613_v33, %v691_v40  ;;  %v701_v31 = vadd.f32 %v751_v20, %v687_v30 }
  0xc4   :  { %v693_v57 = vsel %vm670_vm7, %v620_v25, %v692_v29  ;;  %704 = vst.msk [vmem:[%s1451_s7 + $0x8] sm:$0xff] %vm212_vm0, %v700_v34 }
  0xc5   :  { %v694_v38 = vsel %vm672_vm8, %v627_v14, %v693_v57  ;;  %705 = vst.msk [vmem:[%s1451_s7 + $0x10] sm:$0xff] %vm212_vm0, %v701_v31 }
  0xc6   :  { %v702_v19 = vadd.f32 %v694_v38, %v979_v6 }
  0xc8   :  { %706 = vst.msk [vmem:[%s1451_s7 + $0x18] sm:$0xff] %vm212_vm0, %v702_v19 }
  0xc9   :  { %776 = dma.done.wait [#allocation3], 16  }
  0xca   :  { %777 = vsyncadd [#allocation3], 4294967280 }
  0xcb   :  { %743 = vsyncpa [#allocation3], 1 }

</bundles_post_ra>
